<compile_context>
chip_gen: v5e
topology: v5e:2x2
jax: 0.10.0
libtpu: 0.0.40
codegen_flags: <defaults>
</compile_context>

<pallas_src>
import functools

import jax
import jax.numpy as jnp
from jax.experimental import pallas as pl
from jax.experimental.pallas import tpu as pltpu


def head_project_kernel(x_ref, w1_ref, b1_ref, w2_ref, b2_ref, o_ref):
    # x_ref : (tb, D_in)      input dtype (f32); cast to matmul dtype in-kernel
    # w1_ref: (D_in, D_in)    matmul dtype, resident (single buffered)
    # b1_ref: (1, D_in)       f32
    # w2_ref: (D_in, tn)      matmul dtype (resident when it fits)
    # b2_ref: (1, tn)         f32
    # o_ref : (tb, tn)
    # Cast x to the weight/matmul dtype here (VPU cast hides under the MXU and
    # avoids a separate wrapper-side XLA pass over HBM).
    x = x_ref[...].astype(w1_ref.dtype)
    # First GEMM on the MXU, f32 accumulation.
    h = jnp.dot(x, w1_ref[...], preferred_element_type=jnp.float32)
    # Bias + ReLU in f32 on the VPU (v5e has no bf16 VPU path).
    h = jnp.maximum(h + b1_ref[...], 0.0)
    # Cast the activation back down for the second MXU pass.
    h = h.astype(w2_ref.dtype)
    y = jnp.dot(h, w2_ref[...], preferred_element_type=jnp.float32) + b2_ref[...]
    o_ref[...] = y.astype(o_ref.dtype)


def head_project(x, w1, b1, w2, b2, *, block_b=None, block_n=None,
                 matmul_dtype=jnp.bfloat16):
    """x: (B, D_in); w1: (D_in, D_in); b1: (D_in,); w2: (D_in, D_out); b2: (D_out,)."""
    B0, D_in = x.shape
    D_out = w2.shape[1]
    out_dtype = x.dtype

    # --- One-time weight prep (in production, store params in matmul_dtype so
    # --- this cast never runs on the per-call path). Biases stay f32.
    if matmul_dtype is not None:
        w1 = w1.astype(matmul_dtype)
        w2 = w2.astype(matmul_dtype)
    b1_2d = b1.reshape(1, D_in).astype(jnp.float32)
    b2_2d = b2.reshape(1, D_out).astype(jnp.float32)

    # --- Pad ragged batch to a sublane multiple (8); slice the result afterwards.
    pad_b = (-B0) % 8
    if pad_b:
        x = jnp.pad(x, ((0, pad_b), (0, 0)))
    B = B0 + pad_b

    # --- Device VMEM cap (v7x: 64 MiB/TC, v5e/v6e: 128 MiB).
    try:
        vmem_cap = int(pltpu.get_tpu_info().vmem_capacity_bytes)
    except Exception:
        vmem_cap = 64 * 1024 * 1024  # conservative (v7x-safe) fallback

    wb = jnp.dtype(w1.dtype).itemsize       # matmul/weight bytes
    xb = jnp.dtype(x.dtype).itemsize        # input bytes (f32: cast happens in-kernel)
    ob = jnp.dtype(out_dtype).itemsize

    # --- Batch tile: multiple of 8; force >= 2 tiles when B >= 16 (v7x megacore).
    if block_b is None:
        block_b = B
        if B >= 16:
            for c in (512, 256, 128, 64, 32, 16, 8):
                if c <= B // 2 and B % c == 0:
                    block_b = c
                    break
    assert B % block_b == 0 and block_b % 8 == 0

    # --- Decide whether W2 stays VMEM-resident (drops the output-column grid axis).
    residency_budget = min(16 * 1024 * 1024, vmem_cap // 4)
    w1_bytes = D_in * D_in * wb
    w2_bytes = D_in * D_out * wb
    w2_resident = (w1_bytes + w2_bytes) <= residency_budget
    # TODO(synk): if D_in grows so large that W1 itself cannot stay resident
    # (~24-32 MiB), add a K-tiled "arbitrary" grid axis with an f32 accumulator.

    # --- Output-column tile (only used when W2 is streamed): multiple of 128.
    if w2_resident:
        block_n = D_out
    elif block_n is None:
        block_n = D_out
        for c in (512, 256, 128):
            if D_out >= c and D_out % c == 0:
                block_n = c
                break
    assert D_out % block_n == 0

    n_b = B // block_b
    n_n = D_out // block_n

    # --- VMEM budget estimate (corrected: h is block_b*D_in*4; acc counted separately).
    est = (w1_bytes + D_in * 4                                       # W1 + b1 (resident)
           + 2 * block_b * D_in * xb                                 # x tiles, double buffer
           + block_b * D_in * wb                                     # in-kernel bf16 copy of x
           + (w2_bytes if w2_resident else 2 * D_in * block_n * wb)  # W2
           + (D_out if w2_resident else 2 * block_n) * 4             # b2
           + 2 * block_b * block_n * ob                              # out tiles, double buffer
           + block_b * D_in * 4                                      # f32 hidden activation h
           + block_b * block_n * 4)                                  # f32 GEMM2 accumulator
    vmem_limit = int(min(int(0.85 * vmem_cap), max(32 * 1024 * 1024, 2 * est)))

    cost = pl.CostEstimate(
        flops=2 * B * D_in * (D_in + D_out),
        transcendentals=0,
        bytes_accessed=(B * D_in * xb + w1_bytes + w2_bytes
                        + (D_in + D_out) * 4 + B * D_out * ob),
    )

    # Constant-index blocks: single-buffered (no prefetch overlap needed; halves VMEM).
    resident_spec = functools.partial(pl.BlockSpec, pipeline_mode=pl.Buffered(1))

    if w2_resident:
        # 1-D grid over batch tiles; all weights/biases streamed exactly once.
        grid = (n_b,)
        in_specs = [
            pl.BlockSpec((block_b, D_in), lambda i: (i, 0)),        # x tile
            resident_spec((D_in, D_in), lambda i: (0, 0)),          # W1
            resident_spec((1, D_in), lambda i: (0, 0)),             # b1
            resident_spec((D_in, D_out), lambda i: (0, 0)),         # W2 (resident)
            resident_spec((1, D_out), lambda i: (0, 0)),            # b2
        ]
        out_specs = pl.BlockSpec((block_b, D_out), lambda i: (i, 0))
        semantics = ("parallel",)
    else:
        # Adaptive loop-nest order: batch-outer re-streams W2 n_b times,
        # column-outer re-streams x n_n times -> pick the cheaper one.
        if n_b * D_in * D_out <= n_n * B * D_in:
            grid = (n_b, n_n)
            x_map = lambda i, j: (i, 0)
            w2_map = lambda i, j: (0, j)
            c_map = lambda i, j: (0, 0)
            o_map = lambda i, j: (i, j)
        else:
            grid = (n_n, n_b)
            x_map = lambda j, i: (i, 0)
            w2_map = lambda j, i: (0, j)
            c_map = lambda j, i: (0, 0)
            o_map = lambda j, i: (i, j)
        in_specs = [
            pl.BlockSpec((block_b, D_in), x_map),
            resident_spec((D_in, D_in), c_map),
            resident_spec((1, D_in), c_map),
            pl.BlockSpec((D_in, block_n), w2_map),
            pl.BlockSpec((1, block_n), w2_map),
        ]
        out_specs = pl.BlockSpec((block_b, block_n), o_map)
        semantics = ("parallel", "parallel")

    out = pl.pallas_call(
        head_project_kernel,
        out_shape=jax.ShapeDtypeStruct((B, D_out), out_dtype),
        grid_spec=pl.GridSpec(grid=grid, in_specs=in_specs, out_specs=out_specs),
        compiler_params=pltpu.CompilerParams(
            dimension_semantics=semantics,
            vmem_limit_bytes=vmem_limit,
        ),
        cost_estimate=cost,
    )(x, w1, b1_2d, w2, b2_2d)

    if pad_b:
        out = out[:B0]
    return out


if __name__ == "__main__":
    # Small shapes consistent with the module defaults: input_dim=32, out_dim=128, batch=8.
    # (At this size the kernel is pure fixed overhead; in production batch many heads
    # into one call so tiles reach MXU-native widths.)
    B, D_in, D_out = 8, 32, 128
    key = jax.random.PRNGKey(0)
    kx, kw1, kb1, kw2, kb2 = jax.random.split(key, 5)

    x = jax.random.normal(kx, (B, D_in), dtype=jnp.float32)

    # Deterministic parameter init (mimics nn.Linear's uniform(-1/sqrt(fan_in), ...)).
    bound1 = 1.0 / jnp.sqrt(D_in)
    w1_t = jax.random.uniform(kw1, (D_in, D_in), minval=-bound1, maxval=bound1)   # torch weight (out, in)
    b1 = jax.random.uniform(kb1, (D_in,), minval=-bound1, maxval=bound1)
    bound2 = 1.0 / jnp.sqrt(D_in)
    w2_t = jax.random.uniform(kw2, (D_out, D_in), minval=-bound2, maxval=bound2)  # torch weight (out, in)
    b2 = jax.random.uniform(kb2, (D_out,), minval=-bound2, maxval=bound2)

    # Pre-transpose to (in, out) so the kernel computes x @ W.
    w1 = w1_t.T
    w2 = w2_t.T

    # TODO(synk): apply_bn=True branch (BatchNorm1d) not implemented; the default
    # constructor path (apply_bn=False) skips it.

    out = head_project(x, w1, b1, w2, b2)
    out = jax.block_until_ready(out)

    # Pure-JAX reference with the same bf16-operand / f32-accumulation recipe.
    xb_, w1b_, w2b_ = (a.astype(jnp.bfloat16) for a in (x, w1, w2))
    h_ref = jnp.maximum(jnp.dot(xb_, w1b_, preferred_element_type=jnp.float32) + b1, 0.0)
    ref = jnp.dot(h_ref.astype(jnp.bfloat16), w2b_,
                  preferred_element_type=jnp.float32) + b2

    assert out.shape == (B, D_out)
    assert jnp.allclose(out, ref, atol=1e-2, rtol=1e-2), float(jnp.max(jnp.abs(out - ref)))

    # Also sanity-check against the full-f32 math with a tolerance that covers bf16 rounding.
    # (Pass matmul_dtype=None to head_project if exact fp32 parity with PyTorch is required.)
    ref_f32 = jnp.maximum(x @ w1 + b1, 0.0) @ w2 + b2
    assert jnp.allclose(out, ref_f32, atol=5e-2, rtol=5e-2)

    print("KERNEL_OK")
</pallas_src>

<mosaic_0001>
module attributes {stable_mosaic.version = 11 : i64} {
  func.func @head_project_kernel(%arg0: i32, %arg1: memref<8x32xf32, #tpu.memory_space<vmem>>, %arg2: memref<32x32xbf16, #tpu.memory_space<vmem>>, %arg3: memref<1x32xf32, #tpu.memory_space<vmem>>, %arg4: memref<32x128xbf16, #tpu.memory_space<vmem>>, %arg5: memref<1x128xf32, #tpu.memory_space<vmem>>, %arg6: memref<8x128xf32, #tpu.memory_space<vmem>>) attributes {dimension_semantics = [#tpu.dimension_semantics<parallel>], iteration_bounds = array<i64: 1>, scalar_prefetch = 0 : i64, scratch_operands = 0 : i64, tpu.core_type = #tpu.core_type<tc>, window_params = [{transform_indices = @transform_0, window_bounds = array<i64: 8, 32>}, {pipeline_mode = #tpu.pipeline_mode<synchronous>, transform_indices = @transform_1, window_bounds = array<i64: 32, 32>}, {pipeline_mode = #tpu.pipeline_mode<synchronous>, transform_indices = @transform_2, window_bounds = array<i64: 1, 32>}, {pipeline_mode = #tpu.pipeline_mode<synchronous>, transform_indices = @transform_3, window_bounds = array<i64: 32, 128>}, {pipeline_mode = #tpu.pipeline_mode<synchronous>, transform_indices = @transform_4, window_bounds = array<i64: 1, 128>}, {transform_indices = @transform_5, window_bounds = array<i64: 8, 128>}]} {
    %c0 = arith.constant 0 : index
    %c0_0 = arith.constant 0 : index
    %0 = vector.load %arg1[%c0, %c0_0] : memref<8x32xf32, #tpu.memory_space<vmem>>, vector<8x32xf32>
    %1 = arith.truncf %0 : vector<8x32xf32> to vector<8x32xbf16>
    %c0_1 = arith.constant 0 : index
    %c0_2 = arith.constant 0 : index
    %2 = vector.load %arg2[%c0_1, %c0_2] : memref<32x32xbf16, #tpu.memory_space<vmem>>, vector<32x32xbf16>
    %cst = arith.constant dense<0.000000e+00> : vector<8x32xf32>
    %3 = tpu.matmul %1, %2, %cst {dimension_numbers = #tpu.dot_dimension_numbers<[1], [0], [0], [1], [0, 0, 1, 1], [], []>} : vector<8x32xbf16>, vector<32x32xbf16>, vector<8x32xf32> -> vector<8x32xf32>
    %c0_3 = arith.constant 0 : index
    %c0_4 = arith.constant 0 : index
    %4 = vector.load %arg3[%c0_3, %c0_4] : memref<1x32xf32, #tpu.memory_space<vmem>>, vector<1x32xf32>
    %5 = vector.broadcast %4 : vector<1x32xf32> to vector<8x32xf32>
    %6 = arith.addf %3, %5 : vector<8x32xf32>
    %cst_5 = arith.constant 0.000000e+00 : f32
    %7 = vector.broadcast %cst_5 : f32 to vector<8x32xf32>
    %8 = arith.maximumf %6, %7 : vector<8x32xf32>
    %9 = arith.truncf %8 : vector<8x32xf32> to vector<8x32xbf16>
    %c0_6 = arith.constant 0 : index
    %c0_7 = arith.constant 0 : index
    %10 = vector.load %arg4[%c0_6, %c0_7] : memref<32x128xbf16, #tpu.memory_space<vmem>>, vector<32x128xbf16>
    %cst_8 = arith.constant dense<0.000000e+00> : vector<8x128xf32>
    %11 = tpu.matmul %9, %10, %cst_8 {dimension_numbers = #tpu.dot_dimension_numbers<[1], [0], [0], [1], [0, 0, 1, 1], [], []>} : vector<8x32xbf16>, vector<32x128xbf16>, vector<8x128xf32> -> vector<8x128xf32>
    %c0_9 = arith.constant 0 : index
    %c0_10 = arith.constant 0 : index
    %12 = vector.load %arg5[%c0_9, %c0_10] : memref<1x128xf32, #tpu.memory_space<vmem>>, vector<1x128xf32>
    %13 = vector.broadcast %12 : vector<1x128xf32> to vector<8x128xf32>
    %14 = arith.addf %11, %13 : vector<8x128xf32>
    %c0_11 = arith.constant 0 : index
    %c0_12 = arith.constant 0 : index
    %15 = vector.load %arg6[%c0_11, %c0_12] : memref<8x128xf32, #tpu.memory_space<vmem>>, vector<8x128xf32>
    tpu.vector_store %arg6[%c0_11, %c0_12], %14 {strides = array<i32>} : memref<8x128xf32, #tpu.memory_space<vmem>>, vector<8x128xf32>,
    return
  }
  func.func @transform_0(%arg0: i32) -> (i32, i32) {
    %c0_i32 = arith.constant 0 : i32
    %c0_i32_0 = arith.constant 0 : i32
    return %arg0, %c0_i32 : i32, i32
  }
  func.func @transform_1(%arg0: i32) -> (i32, i32) {
    %c0_i32 = arith.constant 0 : i32
    %c0_i32_0 = arith.constant 0 : i32
    %c0_i32_1 = arith.constant 0 : i32
    return %c0_i32, %c0_i32_0 : i32, i32
  }
  func.func @transform_2(%arg0: i32) -> (i32, i32) {
    %c0_i32 = arith.constant 0 : i32
    %c0_i32_0 = arith.constant 0 : i32
    %c0_i32_1 = arith.constant 0 : i32
    return %c0_i32, %c0_i32_0 : i32, i32
  }
  func.func @transform_3(%arg0: i32) -> (i32, i32) {
    %c0_i32 = arith.constant 0 : i32
    %c0_i32_0 = arith.constant 0 : i32
    %c0_i32_1 = arith.constant 0 : i32
    return %c0_i32, %c0_i32_0 : i32, i32
  }
  func.func @transform_4(%arg0: i32) -> (i32, i32) {
    %c0_i32 = arith.constant 0 : i32
    %c0_i32_0 = arith.constant 0 : i32
    %c0_i32_1 = arith.constant 0 : i32
    return %c0_i32, %c0_i32_0 : i32, i32
  }
  func.func @transform_5(%arg0: i32) -> (i32, i32) {
    %c0_i32 = arith.constant 0 : i32
    %c0_i32_0 = arith.constant 0 : i32
    return %arg0, %c0_i32 : i32, i32
  }
}

</mosaic_0001>

<bundles_post_ra>
// kernel: tpu_custom_call.1
= control target key start
LH: loop header
LB: loop body
LE: loop exit
PB: predicated region body
PF: predicated region fallthrough
CT: control target
= control target key end

     0   :  { %10 = vsyncpa [#allocation3], 0  ;;  %s349_s0 = inlined_call_operand.hbm [shape: f32[8,32], index: 0, kind: input, shape index: {}]   ;;  %s350_s1 = inlined_call_operand.hbm [shape: bf16[32,32], index: 1, kind: input, shape index: {}]   ;;  %s351_s2 = inlined_call_operand.vmem [shape: f32[1,32], index: 2, kind: input, shape index: {}]   ;;  %s352_s3 = inlined_call_operand.hbm [shape: bf16[32,128], index: 3, kind: input, shape index: {}]   ;;  %s353_s4 = inlined_call_operand.vmem [shape: f32[1,128], index: 4, kind: input, shape index: {}]   ;;  %s354_s5 = inlined_call_operand.hbm [shape: f32[8,128], index: 5, kind: output, shape index: {}]  }
   0x1   :  { %11 = vsyncpa [#allocation6], 0  ;;  %s28_s20 = sshll.u32 %s350_s1, 4  ;;  %s29_s20 = int_to_ptr.hbm [resolvable:$true] %s28_s20 }
   0x2   :  { %12 = vsyncpa [#allocation4], 0  ;;  %s295_s21 = smov [#allocation5]   ;;  %s18_s25 = sshll.u32 %s349_s0, 4  ;;  %s19_s25 = int_to_ptr.hbm [resolvable:$true] %s18_s25 }
   0x3   :  { %s30_s22 = sshll.u32 %s295_s21, 4  ;;  %s296_s26 = smov 64   ;;  %s31_s22 = int_to_ptr.vmem [resolvable:$true] %s30_s22 }
   0x4   :  { %s297_s27 = smov 4   ;;  %s298_s28 = smov [#allocation2]  }
   0x5   :  { %36 = dma.hbm_to_vmem [thread:$0]  %s29_s20, 256, %s31_s22, [#allocation6], %s296_s26, %s296_s26, %s297_s27  }
   0x6   :  { %s20_s29 = sshll.u32 %s298_s28, 4  ;;  %s43_s7 = sshll.u32 %s352_s3, 4  ;;  %s21_s29 = int_to_ptr.vmem [resolvable:$true] %s20_s29  ;;  %s44_s7 = int_to_ptr.hbm [resolvable:$true] %s43_s7 }
   0x7   :  { %23 = dma.hbm_to_vmem [thread:$0]  %s19_s25, 128, %s21_s29, [#allocation3]  }
   0x8   :  { %s299_s1 = smov [#allocation7]  }
   0x9   :  { %s45_s8 = sshll.u32 %s299_s1, 4  ;;  %s46_s8 = int_to_ptr.vmem [resolvable:$true] %s45_s8 }
   0xa   :  { %51 = dma.hbm_to_vmem [thread:$0]  %s44_s7, 256, %s46_s8, [#allocation6], %s296_s26, %s296_s26, %s297_s27  }
   0xb   :  { %289 = dma.done.wait [#allocation3], 128  }
   0xc   :  { %290 = vsyncadd [#allocation3], 4294967168 }
   0xd   :  { %291 = dma.done.wait [#allocation6], 512  }
   0xe   :  { %292 = vsyncadd [#allocation6], 4294966784  ;;  %v182_v0 = vld [vmem:[#allocation5 + $0x8] sm:$0xff]  ;;  %v181_v1 = vld [vmem:[#allocation5] sm:$0xff]  ;;  %vm89_vm0 = vcmask 261120   ;;  %s300_s11 = smov [#allocation8]  }
   0xf   :  { %99 = vmatpush.bf16.msra.mxu0 %v182_v0  ;;  %v67_v2 = vld [vmem:[#allocation2] sm:$0xff]  ;;  %v183_v5 = vld [vmem:[#allocation7] sm:$0xff]  ;;  %s150_s12 = sshll.u32 %s300_s11, 4  ;;  %s152_s15 = sshll.u32 %s354_s5, 4  ;;  %s151_s12 = int_to_ptr.vmem [resolvable:$true] %s150_s12  ;;  %s153_s15 = int_to_ptr.hbm [resolvable:$true] %s152_s15 }
  0x10   :  { %v68_v3 = vpack.c.bf16 %v67_v2, %v67_v2  ;;  %v184_v4 = vld [vmem:[#allocation7 + $0x8] sm:$0xff] }
  0x11   :  { %137 = vmatpush.bf16.msra.mxu1 %v184_v4  ;;  %v191_v6 = vld [vmem:[%s351_s2] ss:$0 sm:$0xff] }
  0x12   :  { %v192_v12 = vld [vmem:[%s353_s4] ss:$0 sm:$0xff] }
  0x13   :  { %100 = vmatpush.bf16.msra.mxu0 %v181_v1 }
  0x15   :  { %138 = vmatpush.bf16.msra.mxu1 %v183_v5 }
  0x16   :  { %171 = vmatmul.msk.bf16.vlgmr.msra.gmra.mxu0 %vm89_vm0, %v68_v3 }
  0x93   :  { %v102_v7 = vpop.f32.mrf.mxu0 }
  0x94   :  { %v103_v8 = vadd.f32 %v191_v6, %v102_v7 }
  0x96   :  { %v106_v9 = vmax.f32 %v103_v8, 0.0 }
  0x98   :  { %v107_v10 = vpack.c.bf16 %v106_v9, %v106_v9 }
  0x9a   :  { %180 = vmatmul.msk.bf16.vlgmr.msra.gmra.mxu1 %vm89_vm0, %v107_v10 }
  0x9b   :  { %v104_v11 = vpop.f32.mrf.mxu0 }
 0x117   :  { %v140_v13 = vpop.f32.mrf.mxu1 }
 0x118   :  { %v141_v14 = vadd.f32 %v192_v12, %v140_v13 }
 0x11a   :  { %144 = vst [vmem:[#allocation8] sm:$0xff] %v141_v14 }
 0x11b   :  { %155 = dma.vmem_to_hbm [thread:$0]  %s151_s12, 128, %s153_s15, [#allocation4]  }
 0x11f   :  { %v142_v15 = vpop.f32.mrf.mxu1 }
 0x120   :  { %293 = dma.done.wait [#allocation4], 128  }
 0x121   :  { %294 = vsyncadd [#allocation4], 4294967168 }
 0x122   :  { %160 = vsyncpa [#allocation3], 1 }
 0x123   :  { %161 = vsyncpa [#allocation6], 1 }
 0x124   :  { %162 = vsyncpa [#allocation4], 1 }

</bundles_post_ra>
